<compile_context>
chip_gen: v7x
topology: tpu7x:2x2x1
jax: 0.10.0
libtpu: 0.0.40
codegen_flags: <defaults>
</compile_context>

<pallas_src>
import jax
import jax.numpy as jnp
from jax import lax
from jax.experimental import pallas as pl
from jax.experimental.pallas import tpu as pltpu


# Below this many output elements a plain XLA gather beats a pallas_call.
_SMALL_FASTPATH_ELEMS = 1 << 16


def _round_up(x: int, m: int) -> int:
    return (x + m - 1) // m * m


def _gather_kernel(dom_ref, table_ref, out_ref):
    # dom_ref   : (tile_b, 1)              int32  - domain ids for this batch tile
    # table_ref : (n_domains, domain_dim)  f32    - full table, VMEM-resident
    # out_ref   : (tile_b, domain_dim)     f32    - gathered rows for this tile
    tile_b = dom_ref.shape[0]
    n_domains = table_ref.shape[0]

    dom = dom_ref[...]                                               # (tile_b, 1)
    iota = lax.broadcasted_iota(jnp.int32, (tile_b, n_domains), 1)   # (tile_b, n_domains)
    # Exact 0/1 one-hot in the table dtype. Out-of-range / negative ids produce
    # an all-zero row (torch.nn.Embedding would raise instead).
    onehot = (dom == iota).astype(table_ref.dtype)

    out_ref[...] = jnp.dot(
        onehot, table_ref[...], preferred_element_type=jnp.float32
    ).astype(out_ref.dtype)


def domain_embedding_lookup(table, domains, *, tile_b=None, force_pallas=False):
    """table: (n_domains, domain_dim) f32, domains: (B,) int -> (B, domain_dim)."""
    n_domains, domain_dim = table.shape
    b = int(domains.shape[0])
    dom = domains.astype(jnp.int32)

    # Small-batch fast path: custom-call launch overhead dwarfs the gather.
    if not force_pallas and b * domain_dim < _SMALL_FASTPATH_ELEMS:
        return table[dom]

    # Batch tile: multiple of 8 sublanes, capped at 1024 rows.
    if tile_b is None:
        tile_b = min(1024, _round_up(b, 8))
        steps = pl.cdiv(b, tile_b)
        if steps > 1 and steps % 2 == 1:
            # Prefer an even step count (v7x has 2 TensorCores per chip).
            tile_b = _round_up(pl.cdiv(b, steps + 1), 8)
    tile_b = max(8, _round_up(int(tile_b), 8))

    grid = (pl.cdiv(b, tile_b),)
    dom2 = dom.reshape(b, 1)

    itemsize = jnp.dtype(table.dtype).itemsize
    table_bytes = n_domains * domain_dim * itemsize
    out_bytes = b * domain_dim * itemsize
    # Double-buffered table + id/out tiles + headroom. Only override the scoped
    # VMEM limit (16 MiB on v5e, 32 MiB on v6e/v7x) when the default won't fit.
    est_vmem = 2 * (table_bytes + tile_b * domain_dim * itemsize + tile_b * 4) + (1 << 20)
    vmem_limit = None
    if est_vmem > (24 << 20):
        vmem_limit = min(_round_up(est_vmem, 1 << 20), 64 << 20)
    # TODO(synk): for tables larger than ~half of v7x VMEM (64 MiB physical),
    # tile the table along the feature dim with an extra grid axis instead of
    # keeping the whole table resident.

    out = pl.pallas_call(
        _gather_kernel,
        out_shape=jax.ShapeDtypeStruct((b, domain_dim), table.dtype),
        grid_spec=pl.GridSpec(
            grid=grid,
            in_specs=[
                # Per-tile slice of domain ids; ragged last block is masked by Pallas.
                pl.BlockSpec((tile_b, 1), lambda i: (i, 0)),
                # Full table, same block every step -> stays resident in VMEM.
                pl.BlockSpec((n_domains, domain_dim), lambda i: (0, 0)),
            ],
            out_specs=pl.BlockSpec((tile_b, domain_dim), lambda i: (i, 0)),
        ),
        compiler_params=pltpu.CompilerParams(
            dimension_semantics=("parallel",),
            vmem_limit_bytes=vmem_limit,
        ),
        cost_estimate=pl.CostEstimate(
            flops=2 * b * n_domains * domain_dim,
            transcendentals=0,
            bytes_accessed=out_bytes + table_bytes + b * 4,
        ),
    )(dom2, table)

    return out


class DomainEmbedding:
    """JAX/Pallas port of the PyTorch DomainEmbedding module."""

    def __init__(self, n_domains: int, domain_dim: int, key) -> None:
        # nn.Embedding default init: N(0, 1)
        self.weight = jax.random.normal(key, (n_domains, domain_dim), jnp.float32)
        self.output_dim = domain_dim

    def forward(self, batch):
        # batch: {'wav', 'domains', 'judge_id'}; only 'domains' is used.
        return {"domain-feature": domain_embedding_lookup(self.weight, batch["domains"])}

    def get_output_dim(self):
        return self.output_dim


if __name__ == "__main__":
    key = jax.random.PRNGKey(0)
    k_w, k_d, k_wav = jax.random.split(key, 3)

    n_domains, domain_dim, batch_size = 8, 32, 4
    module = DomainEmbedding(n_domains, domain_dim, k_w)

    batch = {
        # 'wav' and 'judge_id' are carried in the batch dict but unused by forward,
        # exactly as in the PyTorch module.
        "wav": jax.random.normal(k_wav, (batch_size, 160), jnp.float32),
        "domains": jax.random.randint(k_d, (batch_size,), 0, n_domains, dtype=jnp.int32),
        "judge_id": jnp.zeros((batch_size,), jnp.int32),
    }

    # Module forward (small batch -> fast path, same semantics).
    out = module.forward(batch)["domain-feature"]
    jax.block_until_ready(out)
    ref = module.weight[batch["domains"]]
    assert out.shape == (batch_size, domain_dim), out.shape
    assert out.dtype == jnp.float32
    assert jnp.allclose(out, ref), "lookup mismatch vs reference (fast path)"

    # Explicitly exercise the Pallas kernel at the small shape (ragged single block).
    out_p = domain_embedding_lookup(module.weight, batch["domains"], force_pallas=True)
    jax.block_until_ready(out_p)
    assert jnp.allclose(out_p, ref), "Pallas gather mismatch vs reference (small batch)"

    # Larger, non-multiple batch: multi-step grid + ragged last block masking.
    big_domains = jax.random.randint(
        jax.random.PRNGKey(1), (1000,), 0, n_domains, dtype=jnp.int32)
    big_out = domain_embedding_lookup(
        module.weight, big_domains, tile_b=128, force_pallas=True)
    jax.block_until_ready(big_out)
    assert big_out.shape == (1000, domain_dim)
    assert jnp.allclose(big_out, module.weight[big_domains]), \
        "Pallas gather mismatch (large ragged batch)"

    print("KERNEL_OK")
</pallas_src>

<mosaic_0001>
module attributes {stable_mosaic.version = 11 : i64} {
  func.func @_gather_kernel(%arg0: i32, %arg1: memref<8x1xi32, #tpu.memory_space<vmem>>, %arg2: memref<8x32xf32, #tpu.memory_space<vmem>>, %arg3: memref<8x32xf32, #tpu.memory_space<vmem>>) attributes {dimension_semantics = [#tpu.dimension_semantics<parallel>], iteration_bounds = array<i64: 1>, scalar_prefetch = 0 : i64, scratch_operands = 0 : i64, tpu.core_type = #tpu.core_type<tc>, window_params = [{transform_indices = @transform_0, window_bounds = array<i64: 8, 1>}, {pipeline_mode = #tpu.pipeline_mode<synchronous>, transform_indices = @transform_1, window_bounds = array<i64: 8, 32>}, {transform_indices = @transform_2, window_bounds = array<i64: 8, 32>}]} {
    %c0 = arith.constant 0 : index
    %c0_0 = arith.constant 0 : index
    %0 = vector.load %arg1[%c0, %c0_0] : memref<8x1xi32, #tpu.memory_space<vmem>>, vector<8x1xi32>
    %1 = tpu.iota {dimensions = array<i32: 1>} : vector<8x8xi32>
    %2 = vector.broadcast %0 : vector<8x1xi32> to vector<8x8xi32>
    %3 = arith.cmpi eq, %2, %1 : vector<8x8xi32>
    %4 = arith.extui %3 : vector<8x8xi1> to vector<8x8xi32>
    %5 = arith.sitofp %4 : vector<8x8xi32> to vector<8x8xf32>
    %c0_1 = arith.constant 0 : index
    %c0_2 = arith.constant 0 : index
    %6 = vector.load %arg2[%c0_1, %c0_2] : memref<8x32xf32, #tpu.memory_space<vmem>>, vector<8x32xf32>
    %cst = arith.constant dense<0.000000e+00> : vector<8x32xf32>
    %7 = tpu.matmul %5, %6, %cst {dimension_numbers = #tpu.dot_dimension_numbers<[1], [0], [0], [1], [0, 0, 1, 1], [], []>} : vector<8x8xf32>, vector<8x32xf32>, vector<8x32xf32> -> vector<8x32xf32>
    %c0_3 = arith.constant 0 : index
    %c0_4 = arith.constant 0 : index
    %8 = vector.load %arg3[%c0_3, %c0_4] : memref<8x32xf32, #tpu.memory_space<vmem>>, vector<8x32xf32>
    tpu.vector_store %arg3[%c0_3, %c0_4], %7 {strides = array<i32>} : memref<8x32xf32, #tpu.memory_space<vmem>>, vector<8x32xf32>,
    return
  }
  func.func @transform_0(%arg0: i32) -> (i32, i32) {
    %c0_i32 = arith.constant 0 : i32
    %c0_i32_0 = arith.constant 0 : i32
    return %arg0, %c0_i32 : i32, i32
  }
  func.func @transform_1(%arg0: i32) -> (i32, i32) {
    %c0_i32 = arith.constant 0 : i32
    %c0_i32_0 = arith.constant 0 : i32
    %c0_i32_1 = arith.constant 0 : i32
    return %c0_i32, %c0_i32_0 : i32, i32
  }
  func.func @transform_2(%arg0: i32) -> (i32, i32) {
    %c0_i32 = arith.constant 0 : i32
    %c0_i32_0 = arith.constant 0 : i32
    return %arg0, %c0_i32 : i32, i32
  }
}

</mosaic_0001>

<bundles_post_ra>
// kernel: tpu_custom_call.1
= control target key start
LH: loop header
LB: loop body
LE: loop exit
PB: predicated region body
PF: predicated region fallthrough
CT: control target
= control target key end

     0   :  { %s193_s0 = inlined_call_operand.vmem [shape: s32[4,1], index: 0, kind: input, shape index: {}]   ;;  %s194_s1 = inlined_call_operand.vmem [shape: f32[8,32], index: 1, kind: input, shape index: {}]   ;;  %s195_s2 = inlined_call_operand.hbm [shape: f32[4,32], index: 2, kind: output, shape index: {}]  }
   0x1   :  { %v12_v0 = vld [vmem:[%s193_s0] sm:$0xff] }
   0x2   :  { %7 = vsyncpa [#allocation3], 0  ;;  %v154_v1 = vmov 0   ;;  %v155_v2 = vmov 0.0   ;;  %v21_v3 = vld [vmem:[%s194_s1] sm:$0xff]  ;;  %vm156_vm0 = vmmov 0   ;;  %v13_v4 = vlaneseq }
   0x3   :  { %129 = vset.pattern.permute.xlu0 %v154_v1  ;;  %118 = vmatprep.subr.mxu0 %v155_v2  ;;  %vm22_vm1 = vcmask 64512   ;;  %vm96_vm3 = vcmask 261120  }
   0x4   :  { %16 = vperm.xlu0 %129, %v12_v0   ;;  %119 = vmatpush3.msra.mxu0 %v21_v3  ;;  %v14_v5 = vand.u32 127, %v13_v4 }
   0x5   :  { %120 = vmatprep.mubr.msk.f32.mxu0 %vm156_vm0, %v155_v2 }
  0x83   :  { %v17_v6 = vpop.permute.xlu0 %16 }
  0x84   :  { %vm18_vm2 = vcmp.eq.s32.totalorder %v17_v6, %v14_v5 }
  0x85   :  { %v114_v7 = vsel %vm18_vm2, 1.0, %v155_v2 }
  0x86   :  { %121 = vmatmul.mubr.msk.f32.vlgmr.msra.gmra.mrb[0].mxu0 %vm22_vm1, %v114_v7 }
 0x159   :  { %v92_v8 = vpop.f32.mrb[0].mxu0 }
 0x15a   :  { %97 = vst.msk [vmem:[#allocation2] sm:$0xff] %vm96_vm3, %v92_v8  ;;  %v122_v9 = vpop.f32.mrb[1].mxu0 }
 0x15b   :  { %102 = vsyncadd [#allocation3], 64  ;;  %s157_s0 = smov [#allocation2]  }
 0x15c   :  { %s103_s13 = sshll.u32 %s157_s0, 4  ;;  %s104_s13 = int_to_ptr.vmem [resolvable:$true] %s103_s13 }
 0x15d   :  { %s130_s14 = scalar_lea.vmem %s104_s13, 64  ;;  %s134_s1 = scalar_lea.vmem %s104_s13, 128 }
 0x15e   :  { %p131_p0 = scmp.ne.s32.totalorder %s104_s13, %s130_s14  ;;  %p135_p1 = scmp.lt.s32.totalorder %s104_s13, %s104_s13 }
 0x15f   :  { %p136_p2 = scmp.lt.s32.totalorder %s134_s1, %s130_s14 }
 0x161   :  { %p137_p3 = por %p136_p2, %p135_p1 }
 0x163   :  { %p138_p4 = pnand %p137_p3, %p131_p0 }
 0x165   :  { %141 = shalt.err (!%p138_p4)
}
 0x166   :  { %s142_s17 = scalar_lea.hbm %s195_s2, 64 }
 0x167   :  { %p143_p5 = scmp.ne.s32.totalorder %s195_s2, %s142_s17  ;;  %p146_p6 = scmp.lt.u32.totalorder %s142_s17, %s195_s2 }
 0x169   :  { %p148_p7 = pnand %p146_p6, %p143_p5 }
 0x16b   :  { %151 = shalt.err (!%p148_p7)
}
 0x16c   :  { %s158_s22 = smov 64   ;;  %s159_s23 = smov 4  }
 0x16d   :  { %109 = dma.vmem_to_hbm [thread:$0]  %s104_s13, 64, %s195_s2, [#allocation3], %s158_s22, %s158_s22, %s159_s23  }
 0x16e   :  { %152 = dma.done.wait [#allocation3], 128  }
 0x16f   :  { %153 = vsyncadd [#allocation3], 4294967168 }
 0x170   :  { %113 = vsyncpa [#allocation3], 1 }

</bundles_post_ra>
